<compile_context>
chip_gen: v7x
topology: tpu7x:2x2x1
jax: 0.10.0
libtpu: 0.0.40
codegen_flags: <defaults>
</compile_context>

<pallas_src>
import functools

import jax
import jax.numpy as jnp
from jax import lax
from jax.experimental import pallas as pl
from jax.experimental.pallas import tpu as pltpu

D_IN, D_HID, D_OUT = 360, 180, 1
_INV_SQRT2 = 0.7071067811865476


def _round_up(a: int, b: int) -> int:
    return -(-a // b) * b


def fc5_kernel(x_ref, w1_ref, b1_ref, w2_ref, b2_ref, o_ref, *, mxu_bf16: bool):
    # x_ref:(TB,360)  w1_ref:(360,180) resident  b1_ref:(1,180)
    # w2_ref:(180,1) resident           b2_ref:(1,1) SMEM      o_ref:(TB,1)
    x = x_ref[...]
    w1 = w1_ref[...]
    if mxu_bf16:
        # In-kernel (VMEM) cast: no extra HBM round trip, ~3x fewer MXU passes on v5e.
        x = x.astype(jnp.bfloat16)
        w1 = w1.astype(jnp.bfloat16)

    # Layer 1 on the MXU with f32 accumulation.  K=360 / N=180 are handled by
    # Mosaic's internal (8,128) masking -- no explicit feature padding needed.
    h = jnp.dot(x, w1, preferred_element_type=jnp.float32) + b1_ref[...]

    # Exact GELU (erf formulation == torch.nn.GELU() default), f32 on the VPU/EUP.
    # TODO(synk): on v6e/v7x, if a bundle dump shows the VALU slot binding once DMA
    # stops being the floor, compute this block in bf16 (native VPU/EUP) to halve
    # vreg traffic; keep f32 on v5e (no bf16 VPU).
    h = 0.5 * h * (1.0 + lax.erf(h * jnp.float32(_INV_SQRT2)))

    # Layer 2 on the MXU (the MXU has slack; the previous VPU multiply + lane reduce
    # cost VALU/XLU cycles on the nearly-binding units).
    w2 = w2_ref[...]
    if mxu_bf16:
        h = h.astype(jnp.bfloat16)
        w2 = w2.astype(jnp.bfloat16)
    o = jnp.dot(h, w2, preferred_element_type=jnp.float32) + b2_ref[0, 0]
    o_ref[...] = o.astype(o_ref.dtype)
    # TODO(synk): if a bundle dump ever shows store-slot pressure on the (TB,1)
    # column writeback (v7x), switch to a lane-dense (TB/128,128) output slab.


def fc5_forward(x, w1, b1, w2, b2, *, block_rows=4096, mxu_bf16=False):
    """FC5 forward pass.  x:(B,360) -> (B,1).

    w1:(360,180), b1:(180,) or (1,180), w2:(180,1) or (180,), b2 scalar-like.
    Set mxu_bf16=True on v5e (f32 matmul is the binding slot there); accumulation
    and GELU stay f32 either way.
    """
    B = x.shape[0]
    assert x.shape[1] == D_IN

    w1 = jnp.asarray(w1, jnp.float32).reshape(D_IN, D_HID)
    b1 = jnp.asarray(b1, jnp.float32).reshape(1, D_HID)
    w2 = jnp.asarray(w2, jnp.float32).reshape(D_HID, D_OUT)
    b2 = jnp.asarray(b2, jnp.float32).reshape(1, 1)

    # Batch tile: multiple of 8 sublanes, capped so
    #  (a) the grid has >=2 steps when B allows (v7x megacore uses both TCs), and
    #  (b) 2x(tb,360) f32 double-buffered x tiles (+resident weights + h temps)
    #      stay well under v7x's 64 MiB physical / 48 MiB scoped VMEM budget.
    tb_cap = max(8, (int(block_rows) // 8) * 8)
    if B <= 8:
        tb = B  # block dim == full array dim -> exempt from the 8-row rule
    else:
        tb = min(tb_cap, _round_up(-(-B // 2), 8))
    grid = (pl.cdiv(B, tb),)

    kernel = functools.partial(fc5_kernel, mxu_bf16=mxu_bf16)
    out = pl.pallas_call(
        kernel,
        out_shape=jax.ShapeDtypeStruct((B, D_OUT), jnp.float32),
        grid=grid,
        in_specs=[
            # Batch-tiled, double-buffered x stream -- unpadded, ragged last block OK.
            pl.BlockSpec((tb, D_IN), lambda i: (i, 0)),
            # Weights/biases: constant block index -> DMA'd once, resident in VMEM.
            pl.BlockSpec((D_IN, D_HID), lambda i: (0, 0)),
            pl.BlockSpec((1, D_HID), lambda i: (0, 0)),
            pl.BlockSpec((D_HID, D_OUT), lambda i: (0, 0)),
            # Scalar layer-2 bias lives in SMEM (no padded (8,128) VMEM tile).
            pl.BlockSpec(memory_space=pltpu.MemorySpace.SMEM),
        ],
        out_specs=pl.BlockSpec((tb, D_OUT), lambda i: (i, 0)),
        compiler_params=pltpu.CompilerParams(
            # Batch tiles are independent -> megacore-shardable on v7x (2 TCs).
            dimension_semantics=("parallel",),
            # ~20 MiB used at tb=4096 f32; 48 MiB leaves headroom yet fits v7x.
            vmem_limit_bytes=48 * 1024 * 1024,
        ),
    )(x, w1, b1, w2, b2)

    return out if out.dtype == x.dtype else out.astype(x.dtype)


def fc5_reference(x, w1, b1, w2, b2):
    h = x @ w1 + jnp.asarray(b1, jnp.float32).reshape(1, -1)
    h = 0.5 * h * (1.0 + lax.erf(h * jnp.float32(_INV_SQRT2)))
    return h @ jnp.asarray(w2, jnp.float32).reshape(D_HID, D_OUT) + jnp.asarray(
        b2, jnp.float32).reshape(1, -1)


def init_params(key):
    # PyTorch nn.Linear init: U(-1/sqrt(fan_in), 1/sqrt(fan_in)).
    k1, k2, k3, k4 = jax.random.split(key, 4)
    lim1 = 1.0 / jnp.sqrt(jnp.float32(D_IN))
    lim2 = 1.0 / jnp.sqrt(jnp.float32(D_HID))
    w1 = jax.random.uniform(k1, (D_IN, D_HID), jnp.float32, -lim1, lim1)
    b1 = jax.random.uniform(k2, (1, D_HID), jnp.float32, -lim1, lim1)
    w2 = jax.random.uniform(k3, (D_HID, D_OUT), jnp.float32, -lim2, lim2)
    b2 = jax.random.uniform(k4, (1, D_OUT), jnp.float32, -lim2, lim2)
    return w1, b1, w2, b2


if __name__ == "__main__":
    key = jax.random.PRNGKey(0)
    kx, kx2, kx3, kp = jax.random.split(key, 4)
    w1, b1, w2, b2 = init_params(kp)

    # Single-tile case (B == 8).
    B = 8
    x = jax.random.normal(kx, (B, D_IN), jnp.float32)
    ref = fc5_reference(x, w1, b1, w2, b2)
    out = jax.block_until_ready(fc5_forward(x, w1, b1, w2, b2))
    assert out.shape == (B, D_OUT)
    assert jnp.allclose(out, ref, atol=1e-4, rtol=1e-4)

    # Multi-tile grid with a ragged last block (200 = 3*64 + 8).
    B2 = 200
    x2 = jax.random.normal(kx2, (B2, D_IN), jnp.float32)
    ref2 = fc5_reference(x2, w1, b1, w2, b2)
    out2 = jax.block_until_ready(fc5_forward(x2, w1, b1, w2, b2, block_rows=64))
    assert out2.shape == (B2, D_OUT)
    assert jnp.allclose(out2, ref2, atol=1e-4, rtol=1e-4)

    # Batch not a multiple of 8 (sub-sublane ragged tail: 13 = 8 + 5).
    B3 = 13
    x3 = jax.random.normal(kx3, (B3, D_IN), jnp.float32)
    ref3 = fc5_reference(x3, w1, b1, w2, b2)
    out3 = jax.block_until_ready(fc5_forward(x3, w1, b1, w2, b2, block_rows=8))
    assert out3.shape == (B3, D_OUT)
    assert jnp.allclose(out3, ref3, atol=1e-4, rtol=1e-4)

    # In-kernel bf16 MXU path (recommended on v5e): f32 accumulation, looser tol.
    out_bf16 = jax.block_until_ready(fc5_forward(x, w1, b1, w2, b2, mxu_bf16=True))
    assert out_bf16.shape == (B, D_OUT)
    assert jnp.allclose(out_bf16, ref, atol=5e-2, rtol=5e-2)

    print("KERNEL_OK")
</pallas_src>

<mosaic_0001>
module attributes {stable_mosaic.version = 11 : i64} {
  func.func @fc5_kernel(%arg0: i32, %arg1: memref<8x360xf32, #tpu.memory_space<vmem>>, %arg2: memref<360x180xf32, #tpu.memory_space<vmem>>, %arg3: memref<1x180xf32, #tpu.memory_space<vmem>>, %arg4: memref<180x1xf32, #tpu.memory_space<vmem>>, %arg5: memref<1x1xf32, #tpu.memory_space<smem>>, %arg6: memref<8x1xf32, #tpu.memory_space<vmem>>) attributes {dimension_semantics = [#tpu.dimension_semantics<parallel>], iteration_bounds = array<i64: 1>, scalar_prefetch = 0 : i64, scratch_operands = 0 : i64, tpu.core_type = #tpu.core_type<tc>, window_params = [{transform_indices = @transform_0, window_bounds = array<i64: 8, 360>}, {pipeline_mode = #tpu.pipeline_mode<synchronous>, transform_indices = @transform_1, window_bounds = array<i64: 360, 180>}, {pipeline_mode = #tpu.pipeline_mode<synchronous>, transform_indices = @transform_2, window_bounds = array<i64: 1, 180>}, {pipeline_mode = #tpu.pipeline_mode<synchronous>, transform_indices = @transform_3, window_bounds = array<i64: 180, 1>}, {transform_indices = @transform_4, window_bounds = array<i64: 1, 1>}, {transform_indices = @transform_5, window_bounds = array<i64: 8, 1>}]} {
    %c0 = arith.constant 0 : index
    %c0_0 = arith.constant 0 : index
    %0 = vector.load %arg1[%c0, %c0_0] : memref<8x360xf32, #tpu.memory_space<vmem>>, vector<8x360xf32>
    %c0_1 = arith.constant 0 : index
    %c0_2 = arith.constant 0 : index
    %1 = vector.load %arg2[%c0_1, %c0_2] : memref<360x180xf32, #tpu.memory_space<vmem>>, vector<360x180xf32>
    %cst = arith.constant dense<0.000000e+00> : vector<8x180xf32>
    %2 = tpu.matmul %0, %1, %cst {dimension_numbers = #tpu.dot_dimension_numbers<[1], [0], [0], [1], [0, 0, 1, 1], [], []>} : vector<8x360xf32>, vector<360x180xf32>, vector<8x180xf32> -> vector<8x180xf32>
    %c0_3 = arith.constant 0 : index
    %c0_4 = arith.constant 0 : index
    %3 = vector.load %arg3[%c0_3, %c0_4] : memref<1x180xf32, #tpu.memory_space<vmem>>, vector<1x180xf32>
    %4 = vector.broadcast %3 : vector<1x180xf32> to vector<8x180xf32>
    %5 = arith.addf %2, %4 : vector<8x180xf32>
    %cst_5 = arith.constant 5.000000e-01 : f32
    %6 = vector.broadcast %cst_5 : f32 to vector<8x180xf32>
    %7 = arith.mulf %6, %5 : vector<8x180xf32>
    %cst_6 = arith.constant 0.707106769 : f32
    %8 = vector.broadcast %cst_6 : f32 to vector<8x180xf32>
    %9 = arith.mulf %5, %8 : vector<8x180xf32>
    %10 = math.erf %9 : vector<8x180xf32>
    %cst_7 = arith.constant 1.000000e+00 : f32
    %11 = vector.broadcast %cst_7 : f32 to vector<8x180xf32>
    %12 = arith.addf %11, %10 : vector<8x180xf32>
    %13 = arith.mulf %7, %12 : vector<8x180xf32>
    %c0_8 = arith.constant 0 : index
    %c0_9 = arith.constant 0 : index
    %14 = vector.load %arg4[%c0_8, %c0_9] : memref<180x1xf32, #tpu.memory_space<vmem>>, vector<180x1xf32>
    %cst_10 = arith.constant dense<0.000000e+00> : vector<8x1xf32>
    %15 = tpu.matmul %13, %14, %cst_10 {dimension_numbers = #tpu.dot_dimension_numbers<[1], [0], [0], [1], [0, 0, 1, 1], [], []>} : vector<8x180xf32>, vector<180x1xf32>, vector<8x1xf32> -> vector<8x1xf32>
    %c0_11 = arith.constant 0 : index
    %c0_12 = arith.constant 0 : index
    %16 = memref.load %arg5[%c0_11, %c0_12] : memref<1x1xf32, #tpu.memory_space<smem>>
    %17 = vector.broadcast %16 : f32 to vector<8x1xf32>
    %18 = arith.addf %15, %17 : vector<8x1xf32>
    %c0_13 = arith.constant 0 : index
    %c0_14 = arith.constant 0 : index
    %19 = vector.load %arg6[%c0_13, %c0_14] : memref<8x1xf32, #tpu.memory_space<vmem>>, vector<8x1xf32>
    tpu.vector_store %arg6[%c0_13, %c0_14], %18 {strides = array<i32>} : memref<8x1xf32, #tpu.memory_space<vmem>>, vector<8x1xf32>,
    return
  }
  func.func @transform_0(%arg0: i32) -> (i32, i32) {
    %c0_i32 = arith.constant 0 : i32
    %c0_i32_0 = arith.constant 0 : i32
    return %arg0, %c0_i32 : i32, i32
  }
  func.func @transform_1(%arg0: i32) -> (i32, i32) {
    %c0_i32 = arith.constant 0 : i32
    %c0_i32_0 = arith.constant 0 : i32
    %c0_i32_1 = arith.constant 0 : i32
    return %c0_i32, %c0_i32_0 : i32, i32
  }
  func.func @transform_2(%arg0: i32) -> (i32, i32) {
    %c0_i32 = arith.constant 0 : i32
    %c0_i32_0 = arith.constant 0 : i32
    %c0_i32_1 = arith.constant 0 : i32
    return %c0_i32, %c0_i32_0 : i32, i32
  }
  func.func @transform_3(%arg0: i32) -> (i32, i32) {
    %c0_i32 = arith.constant 0 : i32
    %c0_i32_0 = arith.constant 0 : i32
    %c0_i32_1 = arith.constant 0 : i32
    return %c0_i32, %c0_i32_0 : i32, i32
  }
  func.func @transform_4(%arg0: i32) -> (i32, i32) {
    %c0_i32 = arith.constant 0 : i32
    %c0_i32_0 = arith.constant 0 : i32
    %c0_i32_1 = arith.constant 0 : i32
    return %c0_i32, %c0_i32_0 : i32, i32
  }
  func.func @transform_5(%arg0: i32) -> (i32, i32) {
    %c0_i32 = arith.constant 0 : i32
    %c0_i32_0 = arith.constant 0 : i32
    return %arg0, %c0_i32 : i32, i32
  }
}

</mosaic_0001>

<bundles_post_ra>
// kernel: tpu_custom_call.1
= control target key start
LH: loop header
LB: loop body
LE: loop exit
PB: predicated region body
PF: predicated region fallthrough
CT: control target
= control target key end

     0   :  { %v525_v3 = vmov 0.0   ;;  %vm126_vm0 = vcmask 850944   ;;  %vm311_vm1 = vcmask 1043456   ;;  %vm307_vm2 = vcmask 424960   ;;  %s927_s1 = inlined_call_operand.vmem [shape: f32[360,180], index: 1, kind: input, shape index: {}]   ;;  %s928_s0 = inlined_call_operand.vmem [shape: f32[8,360], index: 0, kind: input, shape index: {}]   ;;  %s929_s3 = inlined_call_operand.vmem [shape: f32[180,1], index: 3, kind: input, shape index: {}]   ;;  %s930_s2 = inlined_call_operand.vmem [shape: f32[1,180], index: 2, kind: input, shape index: {}]   ;;  %s931_s4 = inlined_call_operand.<no memory space> [shape: f32[1,1], index: 4, kind: input, shape index: {}]   ;;  %s932_s5 = inlined_call_operand.vmem [shape: f32[8,1], index: 5, kind: output, shape index: {}]  }
   0x1   :  { %v25_v0 = vld [vmem:[%s927_s1 + $0x8] sm:$0xff]  ;;  %v27_v1 = vld [vmem:[%s927_s1 + $0x18] sm:$0xff]  ;;  %v24_v2 = vld [vmem:[%s927_s1] sm:$0xff]  ;;  %265 = vmatprep.mubr.f32.mxu1 %v525_v3  ;;  %vm385_vm3 = vcmask 7168  }
   0x2   :  { %v394_v4 = vpack.c.bf16 %v27_v1, %v25_v0  ;;  %v26_v5 = vld [vmem:[%s927_s1 + $0x10] sm:$0xff]  ;;  %v29_v6 = vld [vmem:[%s927_s1 + $0x28] sm:$0xff]  ;;  %v31_v7 = vld [vmem:[%s927_s1 + $0x38] sm:$0xff] }
   0x3   :  { %v396_v8 = vpack.c.bf16 %v26_v5, %v24_v2  ;;  %v398_v9 = vpack.c.bf16 %v31_v7, %v29_v6  ;;  %v28_v10 = vld [vmem:[%s927_s1 + $0x20] sm:$0xff]  ;;  %v30_v11 = vld [vmem:[%s927_s1 + $0x30] sm:$0xff]  ;;  %v33_v12 = vld [vmem:[%s927_s1 + $0x48] sm:$0xff] }
   0x4   :  { %395 = vmatprep.subr.bf16.mxu0 %v394_v4  ;;  %v35_v13 = vld [vmem:[%s927_s1 + $0x58] sm:$0xff]  ;;  %v400_v14 = vpack.c.bf16 %v30_v11, %v28_v10  ;;  %v32_v16 = vld [vmem:[%s927_s1 + $0x40] sm:$0xff]  ;;  %v34_v17 = vld [vmem:[%s927_s1 + $0x50] sm:$0xff] }
   0x5   :  { %397 = vmatpush1.bf16.msra.mxu0 %v396_v8  ;;  %v402_v15 = vpack.c.bf16 %v35_v13, %v33_v12  ;;  %v37_v18 = vld [vmem:[%s927_s1 + $0x68] sm:$0xff]  ;;  %v39_v19 = vld [vmem:[%s927_s1 + $0x78] sm:$0xff]  ;;  %v404_v20 = vpack.c.bf16 %v34_v17, %v32_v16  ;;  %v36_v22 = vld [vmem:[%s927_s1 + $0x60] sm:$0xff] }
   0x6   :  { %399 = vmatprep.subr.bf16.mxu0 %v398_v9  ;;  %v406_v21 = vpack.c.bf16 %v39_v19, %v37_v18  ;;  %v38_v23 = vld [vmem:[%s927_s1 + $0x70] sm:$0xff]  ;;  %v41_v24 = vld [vmem:[%s927_s1 + $0x88] sm:$0xff]  ;;  %v43_v25 = vld [vmem:[%s927_s1 + $0x98] sm:$0xff] }
   0x7   :  { %v408_v26 = vpack.c.bf16 %v38_v23, %v36_v22  ;;  %v40_v27 = vld [vmem:[%s927_s1 + $0x80] sm:$0xff]  ;;  %v410_v28 = vpack.c.bf16 %v43_v25, %v41_v24  ;;  %v42_v29 = vld [vmem:[%s927_s1 + $0x90] sm:$0xff]  ;;  %v89_v30 = vld [vmem:[%s927_s1 + $0x208] sm:$0xff] }
   0x8   :  { %v91_v31 = vld [vmem:[%s927_s1 + $0x218] sm:$0xff]  ;;  %v45_v32 = vld [vmem:[%s927_s1 + $0xa8] sm:$0xff]  ;;  %v88_v35 = vld [vmem:[%s927_s1 + $0x200] sm:$0xff]  ;;  %v412_v37 = vpack.c.bf16 %v42_v29, %v40_v27 }
   0x9   :  { %401 = vmatpush1.bf16.msra.mxu0 %v400_v14  ;;  %v47_v33 = vld [vmem:[%s927_s1 + $0xb8] sm:$0xff]  ;;  %v458_v34 = vpack.c.bf16 %v91_v31, %v89_v30  ;;  %v90_v36 = vld [vmem:[%s927_s1 + $0x210] sm:$0xff]  ;;  %v44_v38 = vld [vmem:[%s927_s1 + $0xa0] sm:$0xff] }
   0xa   :  { %403 = vmatprep.subr.bf16.mxu0 %v402_v15  ;;  %v460_v39 = vpack.c.bf16 %v90_v36, %v88_v35  ;;  %v93_v40 = vld [vmem:[%s927_s1 + $0x228] sm:$0xff]  ;;  %v95_v41 = vld [vmem:[%s927_s1 + $0x238] sm:$0xff]  ;;  %v414_v42 = vpack.c.bf16 %v47_v33, %v45_v32  ;;  %v46_v43 = vld [vmem:[%s927_s1 + $0xb0] sm:$0xff] }
   0xb   :  { %459 = vmatprep.subr.bf16.mxu1 %v458_v34  ;;  %v462_v44 = vpack.c.bf16 %v95_v41, %v93_v40  ;;  %v92_v45 = vld [vmem:[%s927_s1 + $0x220] sm:$0xff]  ;;  %v94_v46 = vld [vmem:[%s927_s1 + $0x230] sm:$0xff]  ;;  %v49_v47 = vld [vmem:[%s927_s1 + $0xc8] sm:$0xff]  ;;  %v416_v52 = vpack.c.bf16 %v46_v43, %v44_v38 }
   0xc   :  { %v51_v48 = vld [vmem:[%s927_s1 + $0xd8] sm:$0xff]  ;;  %461 = vmatpush1.bf16.msra.mxu1 %v460_v39  ;;  %v464_v49 = vpack.c.bf16 %v94_v46, %v92_v45  ;;  %v97_v50 = vld [vmem:[%s927_s1 + $0x248] sm:$0xff]  ;;  %v48_v53 = vld [vmem:[%s927_s1 + $0xc0] sm:$0xff] }
   0xd   :  { %405 = vmatpush1.bf16.msra.mxu0 %v404_v20  ;;  %463 = vmatprep.subr.bf16.mxu1 %v462_v44  ;;  %v99_v51 = vld [vmem:[%s927_s1 + $0x258] sm:$0xff]  ;;  %v96_v55 = vld [vmem:[%s927_s1 + $0x240] sm:$0xff]  ;;  %v98_v56 = vld [vmem:[%s927_s1 + $0x250] sm:$0xff]  ;;  %v418_v57 = vpack.c.bf16 %v51_v48, %v49_v47 }
   0xe   :  { %407 = vmatprep.subr.bf16.mxu0 %v406_v21  ;;  %v466_v54 = vpack.c.bf16 %v99_v51, %v97_v50  ;;  %v50_v58 = vld [vmem:[%s927_s1 + $0xd0] sm:$0xff]  ;;  %v101_v59 = vld [vmem:[%s927_s1 + $0x268] sm:$0xff]  ;;  %v103_v60 = vld [vmem:[%s927_s1 + $0x278] sm:$0xff]  ;;  %v468_v63 = vpack.c.bf16 %v98_v56, %v96_v55  ;;  %v526_v56 = vmov 0.0|0.0  }
   0xf   :  { %v53_v61 = vld [vmem:[%s927_s1 + $0xe8] sm:$0xff]  ;;  %v55_v62 = vld [vmem:[%s927_s1 + $0xf8] sm:$0xff]  ;;  %v470_v0 = vpack.c.bf16 %v103_v60, %v101_v59  ;;  %v100_v1 = vld [vmem:[%s927_s1 + $0x260] sm:$0xff]  ;;  %v420_v4 = vpack.c.bf16 %v50_v58, %v48_v53 }
  0x10   :  { %465 = vmatpush1.bf16.msra.mxu1 %v464_v49  ;;  %v102_v2 = vld [vmem:[%s927_s1 + $0x270] sm:$0xff]  ;;  %v105_v5 = vld [vmem:[%s927_s1 + $0x288] sm:$0xff]  ;;  %v107_v6 = vld [vmem:[%s927_s1 + $0x298] sm:$0xff]  ;;  %v422_v7 = vpack.c.bf16 %v55_v62, %v53_v61 }
  0x11   :  { %409 = vmatpush1.bf16.msra.mxu0 %v408_v26  ;;  %467 = vmatprep.subr.bf16.mxu1 %v466_v54  ;;  %v52_v8 = vld [vmem:[%s927_s1 + $0xe0] sm:$0xff]  ;;  %v54_v9 = vld [vmem:[%s927_s1 + $0xf0] sm:$0xff]  ;;  %v57_v10 = vld [vmem:[%s927_s1 + $0x108] sm:$0xff]  ;;  %v472_v12 = vpack.c.bf16 %v102_v2, %v100_v1  ;;  %v474_v13 = vpack.c.bf16 %v107_v6, %v105_v5 }
  0x12   :  { %411 = vmatprep.subr.bf16.mxu0 %v410_v28  ;;  %v59_v11 = vld [vmem:[%s927_s1 + $0x118] sm:$0xff]  ;;  %v104_v14 = vld [vmem:[%s927_s1 + $0x280] sm:$0xff]  ;;  %v106_v15 = vld [vmem:[%s927_s1 + $0x290] sm:$0xff]  ;;  %v424_v16 = vpack.c.bf16 %v54_v9, %v52_v8 }
  0x13   :  { %v109_v17 = vld [vmem:[%s927_s1 + $0x2a8] sm:$0xff]  ;;  %v111_v18 = vld [vmem:[%s927_s1 + $0x2b8] sm:$0xff]  ;;  %v426_v19 = vpack.c.bf16 %v59_v11, %v57_v10  ;;  %v56_v20 = vld [vmem:[%s927_s1 + $0x100] sm:$0xff]  ;;  %v476_v25 = vpack.c.bf16 %v106_v15, %v104_v14 }
  0x14   :  { %469 = vmatpush1.bf16.msra.mxu1 %v468_v63  ;;  %v58_v21 = vld [vmem:[%s927_s1 + $0x110] sm:$0xff]  ;;  %v22_v22 = vld [vmem:[%s928_s0 + $0x8] sm:$0xff]  ;;  %v63_v24 = vld [vmem:[%s927_s1 + $0x138] sm:$0xff]  ;;  %v478_v26 = vpack.c.bf16 %v111_v18, %v109_v17 }
  0x15   :  { %413 = vmatpush1.bf16.msra.mxu0 %v412_v37  ;;  %471 = vmatprep.subr.bf16.mxu1 %v470_v0  ;;  %v61_v23 = vld [vmem:[%s927_s1 + $0x128] sm:$0xff]  ;;  %v108_v27 = vld [vmem:[%s927_s1 + $0x2a0] sm:$0xff]  ;;  %v110_v28 = vld [vmem:[%s927_s1 + $0x2b0] sm:$0xff]  ;;  %v428_v29 = vpack.c.bf16 %v58_v21, %v56_v20 }
  0x16   :  { %415 = vmatprep.subr.bf16.mxu0 %v414_v42  ;;  %194 = vmatprep.mubr.f32.mxu0 %v22_v22  ;;  %v430_v30 = vpack.c.bf16 %v63_v24, %v61_v23  ;;  %v60_v31 = vld [vmem:[%s927_s1 + $0x120] sm:$0xff]  ;;  %v62_v32 = vld [vmem:[%s927_s1 + $0x130] sm:$0xff]  ;;  %v65_v33 = vld [vmem:[%s927_s1 + $0x148] sm:$0xff]  ;;  %v480_v35 = vpack.c.bf16 %v110_v28, %v108_v27 }
  0x17   :  { %v67_v34 = vld [vmem:[%s927_s1 + $0x158] sm:$0xff]  ;;  %v432_v36 = vpack.c.bf16 %v62_v32, %v60_v31  ;;  %v64_v37 = vld [vmem:[%s927_s1 + $0x140] sm:$0xff]  ;;  %v113_v38 = vld [vmem:[%s927_s1 + $0x2c8] sm:$0xff] }
  0x18   :  { %473 = vmatpush1.bf16.msra.mxu1 %v472_v12  ;;  %v434_v39 = vpack.c.bf16 %v67_v34, %v65_v33  ;;  %v66_v40 = vld [vmem:[%s927_s1 + $0x150] sm:$0xff]  ;;  %v282_v41 = vld [vmem:[%s929_s3] sm:$0xff]  ;;  %v283_v42 = vld [vmem:[%s929_s3 + $0x8] sm:$0xff] }
  0x19   :  { %417 = vmatpush1.bf16.msra.mxu0 %v416_v52  ;;  %475 = vmatprep.subr.bf16.mxu1 %v474_v13  ;;  %v69_v43 = vld [vmem:[%s927_s1 + $0x168] sm:$0xff]  ;;  %v71_v44 = vld [vmem:[%s927_s1 + $0x178] sm:$0xff]  ;;  %v112_v45 = vld [vmem:[%s927_s1 + $0x2c0] sm:$0xff]  ;;  %v436_v46 = vpack.c.bf16 %v66_v40, %v64_v37  ;;  %v483_v49 = vpack.c.bf16 %v283_v42, %v282_v41 }
  0x1a   :  { %419 = vmatprep.subr.bf16.mxu0 %v418_v57  ;;  %v68_v47 = vld [vmem:[%s927_s1 + $0x160] sm:$0xff]  ;;  %v23_v48 = vld [vmem:[%s928_s0 + $0x10] sm:$0xff]  ;;  %v438_v50 = vpack.c.bf16 %v71_v44, %v69_v43  ;;  %v285_v53 = vld [vmem:[%s929_s3 + $0x18] sm:$0xff] }
  0x1b   :  { %v70_v51 = vld [vmem:[%s927_s1 + $0x170] sm:$0xff]  ;;  %v73_v54 = vld [vmem:[%s927_s1 + $0x188] sm:$0xff]  ;;  %v75_v55 = vld [vmem:[%s927_s1 + $0x198] sm:$0xff] }
  0x1c   :  { %477 = vmatpush1.bf16.msra.mxu1 %v476_v25  ;;  %v284_v52 = vld [vmem:[%s929_s3 + $0x10] sm:$0xff]  ;;  %v440_v57 = vpack.c.bf16 %v70_v51, %v68_v47  ;;  %v72_v58 = vld [vmem:[%s927_s1 + $0x180] sm:$0xff]  ;;  %v442_v60 = vpack.c.bf16 %v75_v55, %v73_v54  ;;  %v287_v63 = vld [vmem:[%s929_s3 + $0x28] sm:$0xff] }
  0x1d   :  { %421 = vmatpush1.bf16.msra.mxu0 %v420_v4  ;;  %479 = vmatprep.subr.bf16.mxu1 %v478_v26  ;;  %v486_v59 = vpack.c.bf16 %v285_v53, %v284_v52  ;;  %v74_v61 = vld [vmem:[%s927_s1 + $0x190] sm:$0xff]  ;;  %v286_v62 = vld [vmem:[%s929_s3 + $0x20] sm:$0xff]  ;;  %v77_v0 = vld [vmem:[%s927_s1 + $0x1a8] sm:$0xff] }
  0x1e   :  { %423 = vmatprep.subr.bf16.mxu0 %v422_v7  ;;  %v79_v1 = vld [vmem:[%s927_s1 + $0x1b8] sm:$0xff]  ;;  %v444_v2 = vpack.c.bf16 %v74_v61, %v72_v58  ;;  %v76_v4 = vld [vmem:[%s927_s1 + $0x1a0] sm:$0xff]  ;;  %v489_v5 = vpack.c.bf16 %v287_v63, %v286_v62  ;;  %v78_v7 = vld [vmem:[%s927_s1 + $0x1b0] sm:$0xff] }
  0x1f   :  { %v446_v6 = vpack.c.bf16 %v79_v1, %v77_v0  ;;  %v288_v8 = vld [vmem:[%s929_s3 + $0x30] sm:$0xff]  ;;  %v289_v9 = vld [vmem:[%s929_s3 + $0x38] sm:$0xff]  ;;  %v81_v10 = vld [vmem:[%s927_s1 + $0x1c8] sm:$0xff]  ;;  %v448_v12 = vpack.c.bf16 %v78_v7, %v76_v4 }
  0x20   :  { %481 = vmatpush1.bf16.msra.mxu1 %v480_v35  ;;  %v83_v11 = vld [vmem:[%s927_s1 + $0x1d8] sm:$0xff]  ;;  %v80_v13 = vld [vmem:[%s927_s1 + $0x1c0] sm:$0xff]  ;;  %v492_v14 = vpack.c.bf16 %v289_v9, %v288_v8  ;;  %v291_v18 = vld [vmem:[%s929_s3 + $0x48] sm:$0xff]  ;;  %v306_v8 = vstv %s931_s4 }
  0x21   :  { %425 = vmatpush1.bf16.msra.mxu0 %v424_v16  ;;  %225 = vmatprep.subr.mxu1 %v113_v38  ;;  %v450_v15 = vpack.c.bf16 %v83_v11, %v81_v10  ;;  %v82_v16 = vld [vmem:[%s927_s1 + $0x1d0] sm:$0xff]  ;;  %v290_v17 = vld [vmem:[%s929_s3 + $0x40] sm:$0xff]  ;;  %v87_v20 = vld [vmem:[%s927_s1 + $0x1f8] sm:$0xff] }
  0x22   :  { %427 = vmatprep.subr.bf16.mxu0 %v426_v19  ;;  %v85_v19 = vld [vmem:[%s927_s1 + $0x1e8] sm:$0xff]  ;;  %v452_v21 = vpack.c.bf16 %v82_v16, %v80_v13  ;;  %v84_v22 = vld [vmem:[%s927_s1 + $0x1e0] sm:$0xff]  ;;  %v495_v23 = vpack.c.bf16 %v291_v18, %v290_v17  ;;  %v86_v25 = vld [vmem:[%s927_s1 + $0x1f0] sm:$0xff] }
  0x23   :  { %v454_v24 = vpack.c.bf16 %v87_v20, %v85_v19  ;;  %v292_v26 = vld [vmem:[%s929_s3 + $0x50] sm:$0xff]  ;;  %v293_v27 = vld [vmem:[%s929_s3 + $0x58] sm:$0xff]  ;;  %v456_v28 = vpack.c.bf16 %v86_v25, %v84_v22  ;;  %v294_v31 = vld [vmem:[%s929_s3 + $0x60] sm:$0xff] }
  0x24   :  { %226 = vmatpush1.msra.mxu1 %v112_v45  ;;  %v295_v32 = vld [vmem:[%s929_s3 + $0x68] sm:$0xff]  ;;  %v296_v34 = vld [vmem:[%s929_s3 + $0x70] sm:$0xff]  ;;  %v297_v35 = vld [vmem:[%s929_s3 + $0x78] sm:$0xff] }
  0x25   :  { %429 = vmatpush1.bf16.msra.mxu0 %v428_v29  ;;  %391 = vmatmul.mubr.msk.f32.vlgmr.msra.gmra.mrb[0].mxu1 %vm126_vm0, %v23_v48  ;;  %v498_v29 = vpack.c.bf16 %v293_v27, %v292_v26  ;;  %v501_v33 = vpack.c.bf16 %v295_v32, %v294_v31  ;;  %v298_v37 = vld [vmem:[%s929_s3 + $0x80] sm:$0xff]  ;;  %v299_v38 = vld [vmem:[%s929_s3 + $0x88] sm:$0xff]  ;;  %v300_v40 = vld [vmem:[%s929_s3 + $0x90] sm:$0xff] }
  0x26   :  { %431 = vmatprep.subr.bf16.mxu0 %v430_v30  ;;  %482 = vmatprep.subr.bf16.mxu1 %v526_v56  ;;  %v21_v30 = vld [vmem:[%s928_s0] sm:$0xff]  ;;  %v301_v41 = vld [vmem:[%s929_s3 + $0x98] sm:$0xff]  ;;  %v303_v44 = vld [vmem:[%s929_s3 + $0xa8] sm:$0xff] }
  0x27   :  { %484 = vmatpush1.bf16.msra.mxu1 %v483_v49  ;;  %v510_v42 = vpack.c.bf16 %v301_v41, %v300_v40  ;;  %v302_v43 = vld [vmem:[%s929_s3 + $0xa0] sm:$0xff]  ;;  %v116_v49 = vlaneseq }
  0x28   :  { %485 = vmatprep.subr.bf16.mxu1 %v526_v56  ;;  %v513_v45 = vpack.c.bf16 %v303_v44, %v302_v43  ;;  %v114_v52 = vld [vmem:[%s930_s2] sm:$0x3] }
  0x29   :  { %433 = vmatpush1.bf16.msra.mxu0 %v432_v36  ;;  %v504_v36 = vpack.c.bf16 %v297_v35, %v296_v34 }
  0x2a   :  { %435 = vmatprep.subr.bf16.mxu0 %v434_v39  ;;  %v507_v39 = vpack.c.bf16 %v299_v38, %v298_v37 }
  0x2b   :  { %487 = vmatpush1.bf16.msra.mxu1 %v486_v59 }
  0x2c   :  { %488 = vmatprep.subr.bf16.mxu1 %v526_v56 }
  0x2d   :  { %437 = vmatpush1.bf16.msra.mxu0 %v436_v46  ;;  %v304_v46 = vld [vmem:[%s929_s3 + $0xb0] sm:$0xf] }
  0x2e   :  { %439 = vmatprep.subr.bf16.mxu0 %v438_v50  ;;  %v117_v50 = vshrl.u32 %v116_v49, 7 }
  0x2f   :  { %490 = vmatpush1.bf16.msra.mxu1 %v489_v5 }
  0x30   :  { %491 = vmatprep.subr.bf16.mxu1 %v526_v56  ;;  %v118_v51 = vsub.s32 0, %v117_v50  ;;  %v122_v53 = vsub.s32 1, %v117_v50 }
  0x31   :  { %441 = vmatpush1.bf16.msra.mxu0 %v440_v57 }
  0x32   :  { %443 = vmatprep.subr.bf16.mxu0 %v442_v60  ;;  %v119_v54 = vrot.slane %v114_v52, %v118_v51  ;;  %v123_v55 = vrot.slane %v114_v52, %v122_v53 }
  0x33   :  { %493 = vmatpush1.bf16.msra.mxu1 %v492_v14 }
  0x34   :  { %494 = vmatprep.subr.bf16.mxu1 %v526_v56 }
  0x35   :  { %445 = vmatpush1.bf16.msra.mxu0 %v444_v2 }
  0x36   :  { %447 = vmatprep.subr.bf16.mxu0 %v446_v6 }
  0x37   :  { %496 = vmatpush1.bf16.msra.mxu1 %v495_v23 }
  0x38   :  { %497 = vmatprep.subr.bf16.mxu1 %v526_v56 }
  0x39   :  { %449 = vmatpush1.bf16.msra.mxu0 %v448_v12 }
  0x3a   :  { %451 = vmatprep.subr.bf16.mxu0 %v450_v15 }
  0x3b   :  { %499 = vmatpush1.bf16.msra.mxu1 %v498_v29 }
  0x3c   :  { %500 = vmatprep.subr.bf16.mxu1 %v526_v56 }
  0x3d   :  { %453 = vmatpush1.bf16.msra.mxu0 %v452_v21 }
  0x3e   :  { %455 = vmatprep.subr.bf16.mxu0 %v454_v24 }
  0x3f   :  { %502 = vmatpush1.bf16.msra.mxu1 %v501_v33 }
  0x40   :  { %503 = vmatprep.subr.bf16.mxu1 %v526_v56 }
  0x41   :  { %457 = vmatpush1.bf16.msra.mxu0 %v456_v28 }
  0x43   :  { %505 = vmatpush1.bf16.msra.mxu1 %v504_v36 }
  0x44   :  { %195 = vmatmul.mubr.f32.vlgmr.msra.gmra.mrb[0].mxu0 %v21_v30  ;;  %506 = vmatprep.subr.bf16.mxu1 %v526_v56 }
  0x47   :  { %508 = vmatpush1.bf16.msra.mxu1 %v507_v39 }
  0x48   :  { %509 = vmatprep.subr.bf16.mxu1 %v526_v56 }
  0x4b   :  { %511 = vmatpush1.bf16.msra.mxu1 %v510_v42 }
  0x4c   :  { %512 = vmatprep.subr.bf16.mxu1 %v526_v56 }
  0x4f   :  { %514 = vmatpush1.bf16.msra.mxu1 %v513_v45 }
  0x50   :  { %359 = vmatprep.subr.mxu1 %v525_v3 }
  0x53   :  { %392 = vmatpush1.msk.msra.mxu1 %vm311_vm1, %v304_v46 }
  0xf8   :  { %v267_v47 = vpop.f32.mrb[0].mxu1 }
  0xf9   :  { %v269_v48 = vpop.f32.mrb[1].mxu1 }
 0x117   :  { %v196_v56 = vpop.f32.mrb[0].mxu0 }
 0x118   :  { %v197_v3 = vadd.f32 %v196_v56, %v119_v54  ;;  %v198_v57 = vpop.f32.mrb[1].mxu0 }
 0x119   :  { %v199_v58 = vadd.f32 %v198_v57, %v123_v55 }
 0x11a   :  { %v268_v59 = vadd.f32 %v267_v47, %v197_v3 }
 0x11b   :  { %v270_v60 = vadd.f32 %v269_v48, %v199_v58 }
 0x11c   :  { %v274_v61 = vmul.f32 0.70710677, %v268_v59  ;;  %v272_v5 = vmul.f32 0.5, %v268_v59 }
 0x11d   :  { %v275_v62 = vmul.f32 0.70710677, %v270_v60  ;;  %v273_v2 = vmul.f32 0.5, %v270_v60 }
 0x11e   :  { %521 = verf.f32 %v274_v61 }
 0x11f   :  { %523 = verf.f32 %v275_v62 }
 0x128   :  { %v522_v63 = vpop.eup %521 }
 0x129   :  { %v524_v0 = vpop.eup %523  ;;  %v278_v1 = vadd.f32 1.0, %v522_v63 }
 0x12a   :  { %v279_v4 = vadd.f32 1.0, %v524_v0 }
 0x12b   :  { %v280_v7 = vmul.f32 %v278_v1, %v272_v5 }
 0x12c   :  { %v281_v6 = vmul.f32 %v279_v4, %v273_v2 }
 0x12e   :  { %393 = vmatprep.mubr.msk.f32.mxu1 %vm307_vm2, %v281_v6 }
 0x12f   :  { %380 = vmatmul.mubr.f32.vlgmr.msra.gmra.mrb[2].mxu1 %v280_v7 }
 0x202   :  { %v381_v9 = vpop.f32.mrb[2].mxu1 }
 0x203   :  { %v382_v10 = vadd.f32 %v381_v9, %v306_v8  ;;  %v383_v11 = vpop.f32.mrb[3].mxu1 }
 0x205   :  { %386 = vst.msk [vmem:[%s932_s5] sm:$0xff] %vm385_vm3, %v382_v10 }

</bundles_post_ra>
